<compile_context>
chip_gen: v7x
topology: tpu7x:2x2x1
jax: 0.10.0
libtpu: 0.0.40
codegen_flags: <defaults>
</compile_context>

<pallas_src>
import math

import jax
import jax.numpy as jnp
from jax import lax
from jax.experimental import pallas as pl
from jax.experimental.pallas import tpu as pltpu

LN_EPS = 1e-5


def _round_up(a: int, b: int) -> int:
    return (a + b - 1) // b * b


def _soft_quantize_kernel(x_ref, w_ref, g_ref, b_ref, q_ref, idx_ref):
    # x_ref: (tm, D)   w_ref: (V, D)   g_ref/b_ref: (1, D), pre-scaled by 1/sqrt(D)
    # q_ref: (tm, D)   idx_ref: (tm, 1) int32
    x = x_ref[...].astype(jnp.float32)

    # --- LayerNorm (biased variance, eps=1e-5, affine), stats in f32.
    # gamma/beta carry the folded 1/sqrt(D) logit scale, so `ln` below is
    # already (LayerNorm(x) / sqrt(D)); the quantize value never uses raw ln.
    mu = jnp.mean(x, axis=-1, keepdims=True)
    xc = x - mu
    var = jnp.mean(xc * xc, axis=-1, keepdims=True)
    ln = xc * lax.rsqrt(var + LN_EPS) * g_ref[...] + b_ref[...]

    # Embedding table stays in its stored dtype (bf16 by default -> full-rate MXU).
    w = w_ref[...]
    ln_mx = ln.astype(w.dtype)

    # logits = (ln/sqrt(D)) @ W.T : contract dim 1 of both operands so the MXU
    # consumes W in its stored [V, D] layout (no XLU transpose), f32 accumulate.
    logits = lax.dot_general(
        ln_mx, w,
        dimension_numbers=(((1,), (1,)), ((), ())),
        preferred_element_type=jnp.float32,
    )  # (tm, V) f32

    # --- softmax statistics; normalization is deferred past the 2nd matmul.
    m = jnp.max(logits, axis=-1, keepdims=True)
    e = jnp.exp(logits - m)                       # (tm, V)
    denom = jnp.sum(e, axis=-1, keepdims=True)    # (tm, 1)

    # --- first-occurrence argmax (torch semantics), probs never materialized.
    ids = lax.broadcasted_iota(jnp.int32, logits.shape, 1)
    cand = jnp.where(logits == m, ids, jnp.iinfo(jnp.int32).max)
    idx_ref[...] = jnp.min(cand, axis=-1, keepdims=True).astype(jnp.int32)

    # --- quantize = probs @ W == (e @ W) * (1/denom) ; only (tm, D) is scaled.
    acc = jnp.dot(e.astype(w.dtype), w, preferred_element_type=jnp.float32)
    q_ref[...] = (acc * pl.reciprocal(denom, approx=False)).astype(q_ref.dtype)


def _vmem_capacity_bytes() -> int:
    try:
        return int(pltpu.get_tpu_info().vmem_capacity_bytes)
    except Exception:
        return 64 * 1024 * 1024  # conservative (v7x per-core) fallback


def _vmem_estimate_bytes(tm: int, d: int, v: int, xb: int, wb: int) -> int:
    io = 2 * tm * d * xb          # x tile (double-buffered)
    io += 2 * tm * d * xb         # quantize output tile (double-buffered)
    io += 2 * tm * 1 * 4          # narrow idx output tile (double-buffered)
    table = v * d * wb + 2 * d * 4            # single-buffered W + gamma + beta
    temps = tm * v * (4 + 4 + 4 + wb)         # logits, exp, int32 argmax temp, exp cast
    temps += tm * d * (4 + 4 + 4 + wb)        # x f32, ln, f32 acc, ln cast
    return io + table + temps


def soft_quantize(x, embd_weight, ln_gamma, ln_beta, *, tm=256,
                  compute_dtype=jnp.bfloat16):
    """SoftQuantize forward.

    x: [B, S, D]; embd_weight: [V, D]; ln_gamma/ln_beta: [D].
    compute_dtype: MXU operand dtype (default bf16; accumulation always f32).
    Returns (quantize [B, S, D], idxs [B, S] int32).
    """
    B, S, D = x.shape
    V, Dw = embd_weight.shape
    assert D == Dw
    N = B * S

    cdt = jnp.dtype(compute_dtype) if compute_dtype is not None else embd_weight.dtype
    w_in = embd_weight.astype(cdt)

    # Fold the 1/sqrt(D) logit scale into the LN affine parameters (one-time,
    # D-element host op; removes a (tm, D) multiply per tile in the kernel).
    inv_sqrt_d = 1.0 / math.sqrt(D)
    gamma2d = (ln_gamma.astype(jnp.float32) * inv_sqrt_d).reshape(1, D)
    beta2d = (ln_beta.astype(jnp.float32) * inv_sqrt_d).reshape(1, D)

    # --- token tile selection -------------------------------------------------
    tm_eff = max(8, min(_round_up(int(tm), 8), _round_up(N, 8)))
    # v7x has two TensorCores; the "parallel" token axis only shards when the
    # grid has >= 2 steps.  Split when each half still keeps >=128 MXU rows
    # (harmless on single-TC v5e/v6e).
    if N >= 256 and N <= tm_eff:
        tm_eff = _round_up((N + 1) // 2, 8)

    xb = x.dtype.itemsize
    wb = w_in.dtype.itemsize
    cap = _vmem_capacity_bytes()
    budget = int(0.7 * cap)
    # Last-resort tm shrink if the honest estimate exceeds the budget.
    # (Table is already single-buffered; see TODO at top for vocab tiling.)
    while tm_eff > 64 and _vmem_estimate_bytes(tm_eff, D, V, xb, wb) > budget:
        tm_eff = max(64, _round_up(tm_eff // 2, 8))
    est = _vmem_estimate_bytes(tm_eff, D, V, xb, wb)
    vmem_limit = int(min(max(est * 5 // 4 + (4 << 20), 16 << 20), budget))

    n_pad = _round_up(N, tm_eff)
    x_flat = x.reshape(N, D)
    if n_pad != N:
        x_flat = jnp.pad(x_flat, ((0, n_pad - N), (0, 0)))

    grid = (n_pad // tm_eff,)
    const = pl.Buffered(1)  # grid-invariant operands: no second buffer
    q_pad, idx_pad = pl.pallas_call(
        _soft_quantize_kernel,
        out_shape=(
            jax.ShapeDtypeStruct((n_pad, D), x.dtype),
            jax.ShapeDtypeStruct((n_pad, 1), jnp.int32),
        ),
        grid_spec=pltpu.PrefetchScalarGridSpec(
            num_scalar_prefetch=0,
            grid=grid,
            in_specs=[
                pl.BlockSpec((tm_eff, D), lambda i: (i, 0)),                        # x tile
                pl.BlockSpec((V, D), lambda i: (0, 0), pipeline_mode=const),        # W (whole, resident)
                pl.BlockSpec((1, D), lambda i: (0, 0), pipeline_mode=const),        # gamma / sqrt(D)
                pl.BlockSpec((1, D), lambda i: (0, 0), pipeline_mode=const),        # beta  / sqrt(D)
            ],
            out_specs=[
                pl.BlockSpec((tm_eff, D), lambda i: (i, 0)),   # quantize
                pl.BlockSpec((tm_eff, 1), lambda i: (i, 0)),   # idx (narrow, 4 B/token)
            ],
        ),
        compiler_params=pltpu.CompilerParams(
            dimension_semantics=("parallel",),   # token axis shards across TCs (v7x megacore)
            vmem_limit_bytes=vmem_limit,
        ),
    )(x_flat, w_in, gamma2d, beta2d)

    quantize = q_pad[:N].reshape(B, S, D)
    idxs = idx_pad[:N, 0].reshape(B, S)
    return quantize, idxs


def _reference(x, w, gamma, beta):
    # Pure-JAX reference mirroring the torch forward (f32 throughout).
    mu = jnp.mean(x, axis=-1, keepdims=True)
    var = jnp.mean((x - mu) ** 2, axis=-1, keepdims=True)
    ln = (x - mu) / jnp.sqrt(var + LN_EPS) * gamma + beta
    logits = ln @ w.T / math.sqrt(x.shape[-1])
    probs = jax.nn.softmax(logits, axis=-1)
    idxs = jnp.argmax(probs, axis=-1).astype(jnp.int32)
    quant = probs @ w
    return quant, idxs


if __name__ == "__main__":
    # --- small shape consistent with the module (batch=2, seq=8, embd=32, vocab=16) ---
    key = jax.random.PRNGKey(0)
    B, S, D, V = 2, 8, 32, 16
    kx, kw, kg, kb = jax.random.split(key, 4)
    x = jax.random.normal(kx, (B, S, D), dtype=jnp.float32)
    embd_weight = jax.random.normal(kw, (V, D), dtype=jnp.float32)          # nn.Embedding(V, D)
    ln_gamma = 1.0 + 0.1 * jax.random.normal(kg, (D,), dtype=jnp.float32)   # nn.LayerNorm weight
    ln_beta = 0.1 * jax.random.normal(kb, (D,), dtype=jnp.float32)          # nn.LayerNorm bias

    q_ref, i_ref = _reference(x, embd_weight, ln_gamma, ln_beta)

    # Exact (f32 operand) path: tight tolerance, exact argmax parity.
    q32, i32 = soft_quantize(x, embd_weight, ln_gamma, ln_beta, compute_dtype=jnp.float32)
    jax.block_until_ready((q32, i32))
    assert q32.shape == (B, S, D) and i32.shape == (B, S)
    assert jnp.allclose(q32, q_ref, atol=1e-4, rtol=1e-4)
    assert jnp.array_equal(i32, i_ref)

    # Default bf16 MXU operand path (f32 accumulation); looser tolerance by design.
    qbf, ibf = soft_quantize(x, embd_weight, ln_gamma, ln_beta)
    jax.block_until_ready((qbf, ibf))
    assert jnp.allclose(qbf, q_ref, atol=7e-2, rtol=7e-2)
    assert jnp.mean((ibf == i_ref).astype(jnp.float32)) >= 0.85   # near-tie flips allowed

    # --- larger shape exercising tm=256 tiles and a multi-step parallel grid ---
    B2, S2, D2, V2 = 2, 512, 128, 256
    kx2, kw2, kg2, kb2 = jax.random.split(jax.random.PRNGKey(1), 4)
    x2 = jax.random.normal(kx2, (B2, S2, D2), dtype=jnp.float32)
    w2 = jax.random.normal(kw2, (V2, D2), dtype=jnp.float32)
    g2 = 1.0 + 0.1 * jax.random.normal(kg2, (D2,), dtype=jnp.float32)
    b2 = 0.1 * jax.random.normal(kb2, (D2,), dtype=jnp.float32)

    q2, idx2 = soft_quantize(x2, w2, g2, b2)   # default bf16 operands
    jax.block_until_ready((q2, idx2))
    q2_ref, i2_ref = _reference(x2, w2, g2, b2)
    assert jnp.allclose(q2, q2_ref, atol=7e-2, rtol=7e-2)
    assert jnp.mean((idx2 == i2_ref).astype(jnp.float32)) >= 0.95

    print("KERNEL_OK")
</pallas_src>

<mosaic_0001>
module attributes {stable_mosaic.version = 11 : i64} {
  func.func @_soft_quantize_kernel(%arg0: i32, %arg1: memref<16x32xf32, #tpu.memory_space<vmem>>, %arg2: memref<16x32xf32, #tpu.memory_space<vmem>>, %arg3: memref<1x32xf32, #tpu.memory_space<vmem>>, %arg4: memref<1x32xf32, #tpu.memory_space<vmem>>, %arg5: memref<16x32xf32, #tpu.memory_space<vmem>>, %arg6: memref<16x1xi32, #tpu.memory_space<vmem>>) attributes {dimension_semantics = [#tpu.dimension_semantics<parallel>], iteration_bounds = array<i64: 1>, scalar_prefetch = 0 : i64, scratch_operands = 0 : i64, tpu.core_type = #tpu.core_type<tc>, window_params = [{transform_indices = @transform_0, window_bounds = array<i64: 16, 32>}, {pipeline_mode = #tpu.pipeline_mode<synchronous>, transform_indices = @transform_1, window_bounds = array<i64: 16, 32>}, {pipeline_mode = #tpu.pipeline_mode<synchronous>, transform_indices = @transform_2, window_bounds = array<i64: 1, 32>}, {pipeline_mode = #tpu.pipeline_mode<synchronous>, transform_indices = @transform_3, window_bounds = array<i64: 1, 32>}, {transform_indices = @transform_4, window_bounds = array<i64: 16, 32>}, {transform_indices = @transform_5, window_bounds = array<i64: 16, 1>}]} {
    %c0 = arith.constant 0 : index
    %c0_0 = arith.constant 0 : index
    %0 = vector.load %arg1[%c0, %c0_0] : memref<16x32xf32, #tpu.memory_space<vmem>>, vector<16x32xf32>
    %cst = arith.constant dense<0.000000e+00> : vector<16xf32>
    %1 = vector.multi_reduction <add>, %0, %cst [1] : vector<16x32xf32> to vector<16xf32>
    %2 = vector.shape_cast %1 : vector<16xf32> to vector<16x1xf32>
    %cst_1 = arith.constant 3.200000e+01 : f32
    %3 = vector.broadcast %cst_1 : f32 to vector<16x1xf32>
    %4 = arith.divf %2, %3 : vector<16x1xf32>
    %5 = vector.broadcast %4 : vector<16x1xf32> to vector<16x32xf32>
    %6 = arith.subf %0, %5 : vector<16x32xf32>
    %7 = arith.mulf %6, %6 : vector<16x32xf32>
    %cst_2 = arith.constant dense<0.000000e+00> : vector<16xf32>
    %8 = vector.multi_reduction <add>, %7, %cst_2 [1] : vector<16x32xf32> to vector<16xf32>
    %9 = vector.shape_cast %8 : vector<16xf32> to vector<16x1xf32>
    %cst_3 = arith.constant 3.200000e+01 : f32
    %10 = vector.broadcast %cst_3 : f32 to vector<16x1xf32>
    %11 = arith.divf %9, %10 : vector<16x1xf32>
    %cst_4 = arith.constant 9.99999974E-6 : f32
    %12 = vector.broadcast %cst_4 : f32 to vector<16x1xf32>
    %13 = arith.addf %11, %12 : vector<16x1xf32>
    %14 = math.rsqrt %13 : vector<16x1xf32>
    %15 = vector.broadcast %14 : vector<16x1xf32> to vector<16x32xf32>
    %16 = arith.mulf %6, %15 : vector<16x32xf32>
    %c0_5 = arith.constant 0 : index
    %c0_6 = arith.constant 0 : index
    %17 = vector.load %arg3[%c0_5, %c0_6] : memref<1x32xf32, #tpu.memory_space<vmem>>, vector<1x32xf32>
    %18 = vector.broadcast %17 : vector<1x32xf32> to vector<16x32xf32>
    %19 = arith.mulf %16, %18 : vector<16x32xf32>
    %c0_7 = arith.constant 0 : index
    %c0_8 = arith.constant 0 : index
    %20 = vector.load %arg4[%c0_7, %c0_8] : memref<1x32xf32, #tpu.memory_space<vmem>>, vector<1x32xf32>
    %21 = vector.broadcast %20 : vector<1x32xf32> to vector<16x32xf32>
    %22 = arith.addf %19, %21 : vector<16x32xf32>
    %c0_9 = arith.constant 0 : index
    %c0_10 = arith.constant 0 : index
    %23 = vector.load %arg2[%c0_9, %c0_10] : memref<16x32xf32, #tpu.memory_space<vmem>>, vector<16x32xf32>
    %cst_11 = arith.constant dense<0.000000e+00> : vector<16x16xf32>
    %24 = tpu.matmul %22, %23, %cst_11 {dimension_numbers = #tpu.dot_dimension_numbers<[1], [1], [0], [0], [0, 0, 1, 0], [], []>} : vector<16x32xf32>, vector<16x32xf32>, vector<16x16xf32> -> vector<16x16xf32>
    %cst_12 = arith.constant dense<0xFF800000> : vector<16xf32>
    %25 = vector.multi_reduction <maximumf>, %24, %cst_12 [1] : vector<16x16xf32> to vector<16xf32>
    %26 = vector.shape_cast %25 : vector<16xf32> to vector<16x1xf32>
    %27 = vector.broadcast %26 : vector<16x1xf32> to vector<16x16xf32>
    %28 = arith.subf %24, %27 : vector<16x16xf32>
    %29 = math.exp %28 : vector<16x16xf32>
    %cst_13 = arith.constant dense<0.000000e+00> : vector<16xf32>
    %30 = vector.multi_reduction <add>, %29, %cst_13 [1] : vector<16x16xf32> to vector<16xf32>
    %31 = vector.shape_cast %30 : vector<16xf32> to vector<16x1xf32>
    %32 = tpu.iota {dimensions = array<i32: 1>} : vector<16x16xi32>
    %33 = vector.broadcast %26 : vector<16x1xf32> to vector<16x16xf32>
    %34 = arith.cmpf oeq, %24, %33 : vector<16x16xf32>
    %c2147483647_i32 = arith.constant 2147483647 : i32
    %35 = vector.broadcast %c2147483647_i32 : i32 to vector<16x16xi32>
    %36 = arith.select %34, %32, %35 : vector<16x16xi1>, vector<16x16xi32>
    %cst_14 = arith.constant dense<2147483647> : vector<16xi32>
    %37 = vector.multi_reduction <minsi>, %36, %cst_14 [1] : vector<16x16xi32> to vector<16xi32>
    %38 = vector.shape_cast %37 : vector<16xi32> to vector<16x1xi32>
    %c0_15 = arith.constant 0 : index
    %c0_16 = arith.constant 0 : index
    %39 = vector.load %arg6[%c0_15, %c0_16] : memref<16x1xi32, #tpu.memory_space<vmem>>, vector<16x1xi32>
    tpu.vector_store %arg6[%c0_15, %c0_16], %38 {strides = array<i32>} : memref<16x1xi32, #tpu.memory_space<vmem>>, vector<16x1xi32>,
    %cst_17 = arith.constant dense<0.000000e+00> : vector<16x32xf32>
    %40 = tpu.matmul %29, %23, %cst_17 {dimension_numbers = #tpu.dot_dimension_numbers<[1], [0], [0], [1], [0, 0, 1, 1], [], []>} : vector<16x16xf32>, vector<16x32xf32>, vector<16x32xf32> -> vector<16x32xf32>
    %41 = tpu.reciprocal %31 : vector<16x1xf32> -> vector<16x1xf32>
    %42 = vector.broadcast %41 : vector<16x1xf32> to vector<16x32xf32>
    %43 = arith.mulf %40, %42 : vector<16x32xf32>
    %c0_18 = arith.constant 0 : index
    %c0_19 = arith.constant 0 : index
    %44 = vector.load %arg5[%c0_18, %c0_19] : memref<16x32xf32, #tpu.memory_space<vmem>>, vector<16x32xf32>
    tpu.vector_store %arg5[%c0_18, %c0_19], %43 {strides = array<i32>} : memref<16x32xf32, #tpu.memory_space<vmem>>, vector<16x32xf32>,
    return
  }
  func.func @transform_0(%arg0: i32) -> (i32, i32) {
    %c0_i32 = arith.constant 0 : i32
    %c0_i32_0 = arith.constant 0 : i32
    return %arg0, %c0_i32 : i32, i32
  }
  func.func @transform_1(%arg0: i32) -> (i32, i32) {
    %c0_i32 = arith.constant 0 : i32
    %c0_i32_0 = arith.constant 0 : i32
    %c0_i32_1 = arith.constant 0 : i32
    return %c0_i32, %c0_i32_0 : i32, i32
  }
  func.func @transform_2(%arg0: i32) -> (i32, i32) {
    %c0_i32 = arith.constant 0 : i32
    %c0_i32_0 = arith.constant 0 : i32
    %c0_i32_1 = arith.constant 0 : i32
    return %c0_i32, %c0_i32_0 : i32, i32
  }
  func.func @transform_3(%arg0: i32) -> (i32, i32) {
    %c0_i32 = arith.constant 0 : i32
    %c0_i32_0 = arith.constant 0 : i32
    %c0_i32_1 = arith.constant 0 : i32
    return %c0_i32, %c0_i32_0 : i32, i32
  }
  func.func @transform_4(%arg0: i32) -> (i32, i32) {
    %c0_i32 = arith.constant 0 : i32
    %c0_i32_0 = arith.constant 0 : i32
    return %arg0, %c0_i32 : i32, i32
  }
  func.func @transform_5(%arg0: i32) -> (i32, i32) {
    %c0_i32 = arith.constant 0 : i32
    %c0_i32_0 = arith.constant 0 : i32
    return %arg0, %c0_i32 : i32, i32
  }
}

</mosaic_0001>

<bundles_post_ra>
// kernel: tpu_custom_call.1
= control target key start
LH: loop header
LB: loop body
LE: loop exit
PB: predicated region body
PF: predicated region fallthrough
CT: control target
= control target key end

     0   :  { %11 = vsyncpa [#allocation3], 0  ;;  %s591_s0 = inlined_call_operand.hbm [shape: f32[16,32], index: 0, kind: input, shape index: {}]   ;;  %s592_s1 = inlined_call_operand.hbm [shape: f32[16,32], index: 1, kind: input, shape index: {}]   ;;  %s593_s2 = inlined_call_operand.vmem [shape: f32[1,32], index: 2, kind: input, shape index: {}]   ;;  %s594_s3 = inlined_call_operand.vmem [shape: f32[1,32], index: 3, kind: input, shape index: {}]   ;;  %s595_s4 = inlined_call_operand.hbm [shape: f32[16,32], index: 4, kind: output, shape index: {0}]   ;;  %s596_s5 = inlined_call_operand.vmem [shape: s32[16,1], index: 5, kind: output, shape index: {1}]  }
   0x1   :  { %12 = vsyncpa [#allocation6], 0 }
   0x2   :  { %13 = vsyncpa [#allocation4], 0  ;;  %s481_s18 = smov [#allocation2]   ;;  %s409_s22 = scalar_lea.hbm %s591_s0, 256 }
   0x3   :  { %s19_s19 = sshll.u32 %s481_s18, 4  ;;  %p410_p0 = scmp.ne.s32.totalorder %s591_s0, %s409_s22  ;;  %s20_s19 = int_to_ptr.vmem [resolvable:$true] %s19_s19 }
   0x4   :  { %p413_p1 = scmp.lt.u32.totalorder %s409_s22, %s591_s0 }
   0x6   :  { %p415_p2 = pnand %p413_p1, %p410_p0 }
   0x8   :  { %418 = shalt.err (!%p415_p2)
}
   0x9   :  { %s419_s27 = scalar_lea.vmem %s20_s19, 256  ;;  %p424_p4 = scmp.lt.s32.totalorder %s20_s19, %s20_s19 }
   0xa   :  { %p420_p3 = scmp.ne.s32.totalorder %s20_s19, %s419_s27  ;;  %p425_p5 = scmp.lt.s32.totalorder %s419_s27, %s419_s27 }
   0xc   :  { %p426_p6 = por %p425_p5, %p424_p4 }
   0xe   :  { %p427_p7 = pnand %p426_p6, %p420_p3 }
  0x10   :  { %430 = shalt.err (!%p427_p7)
}
  0x11   :  { %s482_s28 = smov 128   ;;  %s483_s29 = smov 8  }
  0x12   :  { %25 = dma.hbm_to_vmem [thread:$0]  %s591_s0, 256, %s20_s19, [#allocation3], %s482_s28, %s482_s28, %s483_s29  }
  0x13   :  { %s484_s7 = smov [#allocation5]   ;;  %s431_s11 = scalar_lea.hbm %s592_s1, 256 }
  0x14   :  { %s31_s8 = sshll.u32 %s484_s7, 4  ;;  %p432_p8 = scmp.ne.s32.totalorder %s592_s1, %s431_s11  ;;  %s32_s8 = int_to_ptr.vmem [resolvable:$true] %s31_s8 }
  0x15   :  { %p435_p9 = scmp.lt.u32.totalorder %s431_s11, %s592_s1 }
  0x17   :  { %p437_p10 = pnand %p435_p9, %p432_p8 }
  0x19   :  { %440 = shalt.err (!%p437_p10)
}
  0x1a   :  { %s441_s16 = scalar_lea.vmem %s32_s8, 256  ;;  %p446_p12 = scmp.lt.s32.totalorder %s32_s8, %s32_s8 }
  0x1b   :  { %p442_p11 = scmp.ne.s32.totalorder %s32_s8, %s441_s16  ;;  %p447_p13 = scmp.lt.s32.totalorder %s441_s16, %s441_s16 }
  0x1d   :  { %p448_p0 = por %p447_p13, %p446_p12 }
  0x1f   :  { %p449_p1 = pnand %p448_p0, %p442_p11 }
  0x21   :  { %452 = shalt.err (!%p449_p1)
}
  0x22   :  { %37 = dma.hbm_to_vmem [thread:$0]  %s592_s1, 256, %s32_s8, [#allocation6], %s482_s28, %s482_s28, %s483_s29  }
  0x23   :  { %475 = dma.done.wait [#allocation3], 256  }
  0x24   :  { %476 = vsyncadd [#allocation3], 4294967040 }
  0x25   :  { %477 = dma.done.wait [#allocation6], 256  }
  0x26   :  { %478 = vsyncadd [#allocation6], 4294967040  ;;  %vm50_vm0 = vcmask 261120   ;;  %v48_v0 = vld [vmem:[#allocation2] sm:$0xff]  ;;  %v49_v1 = vld [vmem:[#allocation2 + $0x8] sm:$0xff]  ;;  %vm185_vm2 = vcmask 130048   ;;  %v204_v37 = vlaneseq }
  0x27   :  { %v51_v2 = vsel %vm50_vm0, %v48_v0, 0.0  ;;  %v54_v3 = vsel %vm50_vm0, %v49_v1, 0.0  ;;  %v96_v14 = vld [vmem:[#allocation5] sm:$0xff]  ;;  %v97_v15 = vld [vmem:[#allocation5 + $0x8] sm:$0xff]  ;;  %vm383_vm1 = vmpackc.low %vm50_vm0, %vm50_vm0 }
  0x28   :  { %52 = vadd.xlane.f32.xlu0 %v51_v2  ;;  %v382_v16 = vpack.c.bf16 %v97_v15, %v96_v14  ;;  %v352_v24 = vld [vmem:[%s593_s2] ss:$0 sm:$0xff]  ;;  %v205_v38 = vand.u32 127, %v204_v37  ;;  %s485_s2 = smov [#allocation7]  }
  0x29   :  { %v353_v26 = vld [vmem:[%s594_s3] ss:$0 sm:$0xff]  ;;  %s335_s3 = sshll.u32 %s485_s2, 4  ;;  %s336_s3 = int_to_ptr.vmem [resolvable:$true] %s335_s3 }
  0x2a   :  { %384 = vmatprep.subr.msk.bf16.mxu0 %vm383_vm1, %v382_v16  ;;  %389 = vmatprep.subr.bf16.mxu1 %v382_v16  ;;  %s453_s21 = scalar_lea.vmem %s336_s3, 256  ;;  %p458_p3 = scmp.lt.s32.totalorder %s336_s3, %s336_s3 }
  0x2b   :  { %387 = vmatpush3.bf16.xpose.msk.msra.mxu0 %vm383_vm1, %v382_v16  ;;  %391 = vmatpush3.bf16.msra.mxu1 %v382_v16  ;;  %p454_p2 = scmp.ne.s32.totalorder %s336_s3, %s453_s21  ;;  %p459_p4 = scmp.lt.s32.totalorder %s453_s21, %s453_s21 }
  0x2c   :  { %55 = vadd.xlane.f32.xlu0 %v54_v3 }
  0x2d   :  { %p460_p5 = por %p459_p4, %p458_p3 }
  0x2f   :  { %p461_p6 = pnand %p460_p5, %p454_p2 }
  0xb5   :  { %v53_v4 = vpop.xlane.xlu0 %52 }
  0xb6   :  { %v58_v5 = vmul.f32 0.03125, %v53_v4 }
  0xb8   :  { %v60_v6 = vsub.f32 %v48_v0, %v58_v5 }
  0xb9   :  { %v56_v7 = vpop.xlane.xlu0 %55 }
  0xba   :  { %v59_v8 = vmul.f32 0.03125, %v56_v7  ;;  %v62_v9 = vmul.f32 %v60_v6, %v60_v6 }
  0xbc   :  { %v61_v10 = vsub.f32 %v49_v1, %v59_v8  ;;  %v64_v11 = vsel %vm50_vm0, %v62_v9, 0.0 }
  0xbd   :  { %65 = vadd.xlane.f32.xlu1 %v64_v11 }
  0xbe   :  { %v63_v12 = vmul.f32 %v61_v10, %v61_v10 }
  0xc0   :  { %v67_v13 = vsel %vm50_vm0, %v63_v12, 0.0 }
  0xc1   :  { %68 = vadd.xlane.f32.xlu1 %v67_v13 }
 0x14a   :  { %v66_v17 = vpop.xlane.xlu1 %65 }
 0x14b   :  { %v70_v18 = vmul.f32 0.03125, %v66_v17 }
 0x14d   :  { %v72_v19 = vadd.f32 1e-05, %v70_v18 }
 0x14e   :  { %v69_v20 = vpop.xlane.xlu1 %68 }
 0x14f   :  { %397 = vrsqrt.f32 %v72_v19  ;;  %v71_v21 = vmul.f32 0.03125, %v69_v20 }
 0x151   :  { %v73_v22 = vadd.f32 1e-05, %v71_v21 }
 0x153   :  { %399 = vrsqrt.f32 %v73_v22 }
 0x159   :  { %v398_v23 = vpop.eup %397 }
 0x15a   :  { %v76_v25 = vmul.f32 %v398_v23, %v60_v6 }
 0x15c   :  { %v85_v27 = vmul.f32 %v352_v24, %v76_v25 }
 0x15d   :  { %v400_v28 = vpop.eup %399 }
 0x15e   :  { %v77_v29 = vmul.f32 %v400_v28, %v61_v10  ;;  %v94_v30 = vadd.f32 %v353_v26, %v85_v27 }
 0x160   :  { %v86_v31 = vmul.f32 %v352_v24, %v77_v29  ;;  %372 = vmatprep.mubr.msk.f32.mxu0 %vm50_vm0, %v94_v30 }
 0x162   :  { %v95_v32 = vadd.f32 %v353_v26, %v86_v31 }
 0x164   :  { %373 = vmatmul.mubr.msk.f32.vlgmr.msra.gmra.mrb[0].mxu0 %vm50_vm0, %v95_v32 }
 0x237   :  { %v374_v33 = vpop.f32.mrb[0].mxu0 }
 0x238   :  { %v176_v34 = vpop.f32.mrb[1].mxu0  ;;  %v189_v35 = vsel %vm185_vm2, %v374_v33, -inf }
 0x239   :  { %190 = vmax.xlane.f32.xlu1 %v189_v35  ;;  %v186_v36 = vsel %vm185_vm2, %v176_v34, -inf }
 0x23a   :  { %187 = vmax.xlane.f32.xlu0 %v186_v36 }
 0x2c6   :  { %v191_v39 = vpop.xlane.xlu1 %190 }
 0x2c7   :  { %v193_v40 = vsub.f32 %v374_v33, %v191_v39  ;;  %vm207_vm3 = vcmp.eq.f32.partialorder %v374_v33, %v191_v39  ;;  %v188_v41 = vpop.xlane.xlu0 %187 }
 0x2c8   :  { %v209_v42 = vsel %vm207_vm3, %v205_v38, 2147483647  ;;  %v192_v43 = vsub.f32 %v176_v34, %v188_v41  ;;  %vm206_vm4 = vcmp.eq.f32.partialorder %v176_v34, %v188_v41 }
 0x2c9   :  { %v196_v44 = vmul.f32 1.442695, %v193_v40  ;;  %v208_v45 = vsel %vm206_vm4, %v205_v38, 2147483647  ;;  %v225_v46 = vsel %vm185_vm2, %v209_v42, 2147483647 }
 0x2ca   :  { %v194_v47 = vmul.f32 1.442695, %v192_v43  ;;  %v227_v48 = vshra.s32 %v225_v46, 16  ;;  %v210_v49 = vsel %vm185_vm2, %v208_v45, 2147483647  ;;  %v226_v57 = vand.u32 65535, %v225_v46 }
 0x2cb   :  { %401 = vpow2.f32 %v196_v44  ;;  %v212_v50 = vshra.s32 %v210_v49, 16  ;;  %v211_v58 = vand.u32 65535, %v210_v49 }
 0x2cc   :  { %403 = vpow2.f32 %v194_v47  ;;  %v229_v51 = vcvt.s32.f32 %v227_v48  ;;  %v228_v60 = vcvt.s32.f32 %v226_v57 }
 0x2cd   :  { %v214_v52 = vcvt.s32.f32 %v212_v50  ;;  %v213_v62 = vcvt.s32.f32 %v211_v58 }
 0x2ce   :  { %230 = vmin.xlane.f32.xlu1 %v229_v51 }
 0x2cf   :  { %215 = vmin.xlane.f32.xlu0 %v214_v52 }
 0x2d5   :  { %v402_v53 = vpop.eup %401 }
 0x2d6   :  { %v404_v54 = vpop.eup %403  ;;  %v201_v55 = vsel %vm185_vm2, %v402_v53, 0.0 }
 0x2d7   :  { %202 = vadd.xlane.f32.xlu1 %v201_v55  ;;  %379 = vmatprep.mubr.msk.f32.mxu1 %vm185_vm2, %v404_v54  ;;  %v198_v56 = vsel %vm185_vm2, %v404_v54, 0.0 }
 0x2d8   :  { %380 = vmatmul.mubr.msk.f32.vlgmr.msra.gmra.mrb[0].mxu1 %vm185_vm2, %v402_v53  ;;  %199 = vadd.xlane.f32.xlu0 %v198_v56 }
 0x35b   :  { %v231_v59 = vpop.xlane.xlu1 %230 }
 0x35c   :  { %v216_v61 = vpop.xlane.xlu0 %215  ;;  %vm232_vm5 = vcmp.eq.f32.partialorder %v229_v51, %v231_v59 }
 0x35d   :  { %v233_v63 = vsel %vm232_vm5, %v228_v60, inf  ;;  %vm217_vm6 = vcmp.eq.f32.partialorder %v214_v52, %v216_v61 }
 0x35e   :  { %234 = vmin.xlane.f32.xlu1 %v233_v63  ;;  %v218_v0 = vsel %vm217_vm6, %v213_v62, inf }
 0x35f   :  { %219 = vmin.xlane.f32.xlu0 %v218_v0 }
 0x364   :  { %v203_v1 = vpop.xlane.xlu1 %202 }
 0x365   :  { %v200_v2 = vpop.xlane.xlu0 %199  ;;  %405 = vrcp.f32 %v203_v1 }
 0x366   :  { %407 = vrcp.f32 %v200_v2 }
 0x36f   :  { %v406_v3 = vpop.eup %405 }
 0x370   :  { %v408_v5 = vpop.eup %407 }
 0x3ab   :  { %v381_v4 = vpop.f32.mrb[0].mxu1 }
 0x3ac   :  { %v327_v6 = vmul.f32 %v406_v3, %v381_v4  ;;  %v315_v7 = vpop.f32.mrb[1].mxu1 }
 0x3ad   :  { %v326_v8 = vmul.f32 %v408_v5, %v315_v7 }
 0x3ae   :  { %329 = vst.msk [vmem:[#allocation7 + $0x8] sm:$0xff] %vm50_vm0, %v327_v6 }
 0x3af   :  { %328 = vst.msk [vmem:[#allocation7] sm:$0xff] %vm50_vm0, %v326_v8 }
 0x3b0   :  { %464 = shalt.err (!%p461_p6)
}
 0x3b1   :  { %s465_s24 = scalar_lea.hbm %s595_s4, 256 }
 0x3b2   :  { %p466_p7 = scmp.ne.s32.totalorder %s595_s4, %s465_s24  ;;  %p469_p8 = scmp.lt.u32.totalorder %s465_s24, %s595_s4 }
 0x3b4   :  { %p471_p9 = pnand %p469_p8, %p466_p7 }
 0x3b6   :  { %474 = shalt.err (!%p471_p9)
}
 0x3b7   :  { %341 = dma.vmem_to_hbm [thread:$0]  %s336_s3, 256, %s595_s4, [#allocation4], %s482_s28, %s482_s28, %s483_s29   ;;  %v237_v9 = vcvt.f32.s32 %v231_v59  ;;  %v222_v10 = vcvt.f32.s32 %v216_v61  ;;  %vm240_vm7 = vcmask 7168  }
 0x3b9   :  { %v238_v12 = vshll.u32 %v237_v9, 16  ;;  %v223_v15 = vshll.u32 %v222_v10, 16 }
 0x3eb   :  { %v235_v11 = vpop.xlane.xlu1 %234 }
 0x3ec   :  { %v236_v13 = vcvt.f32.s32 %v235_v11  ;;  %v220_v14 = vpop.xlane.xlu0 %219 }
 0x3ed   :  { %v221_v16 = vcvt.f32.s32 %v220_v14 }
 0x3ee   :  { %v239_v17 = vadd.s32 %v238_v12, %v236_v13 }
 0x3ef   :  { %v224_v18 = vadd.s32 %v223_v15, %v221_v16 }
 0x3f0   :  { %242 = vst.msk [vmem:[%s596_s5 + $0x8] sm:$0xff] %vm240_vm7, %v239_v17 }
 0x3f1   :  { %241 = vst.msk [vmem:[%s596_s5] sm:$0xff] %vm240_vm7, %v224_v18 }
 0x3f2   :  { %479 = dma.done.wait [#allocation4], 256  }
 0x3f3   :  { %480 = vsyncadd [#allocation4], 4294967040 }
 0x3f4   :  { %349 = vsyncpa [#allocation3], 1 }
 0x3f5   :  { %350 = vsyncpa [#allocation6], 1 }
 0x3f6   :  { %351 = vsyncpa [#allocation4], 1 }

</bundles_post_ra>
